<compile_context>
chip_gen: v7x
topology: tpu7x:2x2x1
jax: 0.10.0
libtpu: 0.0.40
codegen_flags: <defaults>
</compile_context>

<pallas_src>
import jax
import jax.numpy as jnp
from jax.experimental import pallas as pl
from jax.experimental.pallas import tpu as pltpu


# --------------------------------------------------------------------------- kernel
def fused_upblock_kernel(x_ref, skip_ref, wx_ref, ws_ref, b_ref, o_ref):
    """One grid step = one input image row (n, i).

    x_ref    : (1, W, Cin)        f32  -- x[n, i, :, :]
    skip_ref : (1, 2W, 2*Cskip)   f32  -- skip[n, 2i:2i+2, :, :]; rows (a, j), cols (b, ck)
    wx_ref   : (2, Cin, 2*Cout)   bf16 -- ConvT(2x2,s=2) composed with the 1x1 conv;
                                          leading dim = sub-pixel row a, cols (b, cout)
    ws_ref   : (2*Cskip, 2*Cout)  bf16 -- kron(I2, W1_skip.T), block-diag over b
    b_ref    : (1, 2*Cout)        f32  -- composed bias, tiled over b
    o_ref    : (1, 2W, 2*Cout)    bf16 -- out[n, 2i:2i+2, :, :]; rows (a, j), cols (b, c)
    """
    w = x_ref.shape[1]
    cdt = wx_ref.dtype

    # In-kernel bf16 cast (no standalone HBM cast passes in the wrapper).
    xa = x_ref[0].astype(cdt)                    # (W, Cin)
    sk = skip_ref[0].astype(cdt)                 # (2W, 2*Cskip)

    # skip path: per-pixel 1x1 conv, already in output (a, j) x (b, c) layout.
    skc = jnp.dot(sk, ws_ref[...], preferred_element_type=jnp.float32)   # (2W, 2*Cout)
    # x path: one MXU matmul per sub-pixel row a; columns already ordered (b, c).
    top = jnp.dot(xa, wx_ref[0], preferred_element_type=jnp.float32)     # (W, 2*Cout)
    bot = jnp.dot(xa, wx_ref[1], preferred_element_type=jnp.float32)     # (W, 2*Cout)

    bias = b_ref[...]                                                    # (1, 2*Cout) f32
    # f32 epilogue, single bf16 cast at the store; no wrapper-side output rearrangement.
    o_ref[0, :w, :] = (top + skc[:w, :] + bias).astype(o_ref.dtype)      # rows a = 0
    o_ref[0, w:, :] = (bot + skc[w:, :] + bias).astype(o_ref.dtype)      # rows a = 1


# --------------------------------------------------------------------------- pallas_call
def fused_upblock(x_rows, skip_rows, wx, ws, bias_row, *, out_dtype=jnp.bfloat16):
    """Single pallas_call; grid = one input image row per step (Nb*H steps)."""
    R, W, Cin = x_rows.shape
    Rs, W2, Cs2 = skip_rows.shape
    assert Rs == R and W2 == 2 * W
    A, Cin2, Co2 = wx.shape
    assert A == 2 and Cin2 == Cin
    assert ws.shape == (Cs2, Co2)
    assert bias_row.shape == (1, Co2)

    # True MXU work (kron(I2) doubles the useful skip flops -- counted as executed,
    # not the 4x over-count the old kron(I4) estimate had).
    flops = R * 2 * (2 * W * Cin * Co2 + W2 * Cs2 * Co2)
    bytes_accessed = (
        x_rows.size * x_rows.dtype.itemsize
        + skip_rows.size * skip_rows.dtype.itemsize
        + wx.size * wx.dtype.itemsize
        + ws.size * ws.dtype.itemsize
        + bias_row.size * bias_row.dtype.itemsize
        + R * W2 * Co2 * jnp.dtype(out_dtype).itemsize
    )

    return pl.pallas_call(
        fused_upblock_kernel,
        out_shape=jax.ShapeDtypeStruct((R, W2, Co2), out_dtype),
        grid_spec=pltpu.PrefetchScalarGridSpec(
            num_scalar_prefetch=0,
            grid=(R,),
            in_specs=[
                pl.BlockSpec((1, W, Cin), lambda k: (k, 0, 0)),      # x row
                pl.BlockSpec((1, W2, Cs2), lambda k: (k, 0, 0)),     # matching 2 skip rows
                # resident (constant index map -> fetched once, never re-DMA'd):
                pl.BlockSpec((2, Cin, Co2), lambda k: (0, 0, 0)),    # composed up+1x1 weight
                pl.BlockSpec((Cs2, Co2), lambda k: (0, 0)),          # kron(I2, Wskip.T)
                pl.BlockSpec((1, Co2), lambda k: (0, 0)),            # composed bias (f32)
            ],
            out_specs=pl.BlockSpec((1, W2, Co2), lambda k: (k, 0, 0)),
        ),
        compiler_params=pltpu.CompilerParams(
            dimension_semantics=("parallel",),
            # explicit VMEM budget (review #5): tiles here are tiny; 48 MiB keeps headroom
            # below v7x's 64 MiB physical while allowing larger production tiles.
            vmem_limit_bytes=48 * 1024 * 1024,
        ),
        cost_estimate=pl.CostEstimate(
            flops=flops, transcendentals=0, bytes_accessed=bytes_accessed
        ),
    )(x_rows, skip_rows, wx, ws, bias_row)


# --------------------------------------------------------------------------- module
class UpBlockWithSkipPallas:
    """Pallas port of UpBlockWithSkip.forward (NHWC layout internally).

    up:    ConvTranspose2d(in_channels, out_channels // 2, kernel_size=2, stride=2)
    cat:   channel concat [up, skip]
    conv:  Conv2d(skip_channels + out_channels // 2, out_channels, kernel_size=1)
    freq_block: not defined in the provided source -> identity.
    All linear stages are pre-composed (f32) into (Wx, Wskip-blockdiag, bias).
    """

    def __init__(self, in_channels, out_channels, skip_channels, key,
                 compute_dtype=jnp.bfloat16):
        self.cin = in_channels
        self.cout = out_channels
        self.chalf = out_channels // 2
        self.cskip = skip_channels
        self.compute_dtype = compute_dtype

        k0, k1, k2, k3 = jax.random.split(key, 4)
        # f32 master weights, same parameterization as the PyTorch module.
        self.wt_up = 0.1 * jax.random.normal(k0, (in_channels, self.chalf, 2, 2), jnp.float32)
        self.b_up = 0.1 * jax.random.normal(k1, (self.chalf,), jnp.float32)
        cin1 = self.chalf + self.cskip
        self.w_1x1 = 0.1 * jax.random.normal(k2, (out_channels, cin1), jnp.float32)
        self.b_1x1 = 0.1 * jax.random.normal(k3, (out_channels,), jnp.float32)

        # ---- algebraic pre-composition in f32, single bf16 cast at the end ----------
        w1_up = self.w_1x1[:, : self.chalf]                     # (Cout, Ch)   (cat=[up,skip])
        w1_skip = self.w_1x1[:, self.chalf:]                    # (Cout, Cskip)
        # Wx[cin, a, b, cout] = sum_ch Wup[cin, ch, a, b] * W1_up[cout, ch]
        wx4 = jnp.einsum("xhab,oh->xabo", self.wt_up, w1_up)    # (Cin, 2, 2, Cout)
        # packed (a, cin, b*Cout+c) so the kernel slices one sub-pixel row per dot.
        self.wx = (
            jnp.transpose(wx4, (1, 0, 2, 3))
            .reshape(2, in_channels, 2 * out_channels)
            .astype(compute_dtype)
        )
        # skip weight block-diagonal over the sub-pixel column b only: the (a,j)x(b,ck)
        # skip view maps straight onto the (a,j)x(b,c) output view with one 2-D matmul.
        self.ws = jnp.kron(jnp.eye(2, dtype=jnp.float32), w1_skip.T).astype(compute_dtype)
        # composed bias b1 + W1_up @ b_up, tiled over b; kept f32.
        bias = self.b_1x1 + w1_up @ self.b_up
        self.bias_row = jnp.tile(bias, 2).reshape(1, 2 * out_channels).astype(jnp.float32)

    def __call__(self, x_nhwc, skip_nhwc):
        Nb, H, W, Cin = x_nhwc.shape
        assert Cin == self.cin
        assert skip_nhwc.shape == (Nb, 2 * H, 2 * W, self.cskip)

        # Free, contiguous row-major views -- no transposes, no extra HBM passes.
        x_rows = x_nhwc.reshape(Nb * H, W, Cin)
        skip_rows = skip_nhwc.reshape(Nb * H, 2 * W, 2 * self.cskip)

        out_rows = fused_upblock(
            x_rows, skip_rows, self.wx, self.ws, self.bias_row, out_dtype=jnp.bfloat16
        )                                                        # (Nb*H, 2W, 2*Cout)

        # Free contiguous view back to NHWC; output stays bf16 (f32 only in-kernel).
        out = out_rows.reshape(Nb, 2 * H, 2 * W, self.cout)
        # TODO(synk): FreqBlock is referenced but not defined in models/base_model.py
        #             -> treated as identity.
        return out


# --------------------------------------------------------------------------- reference
def reference_upblock_nchw(x_nchw, skip_nchw, wt_up, b_up, w1, b1):
    """Pure-JAX f32 reference of the PyTorch forward (FreqBlock = identity)."""
    # ConvTranspose2d(k=2, s=2): each input pixel scatters a disjoint 2x2 patch.
    up = jnp.einsum("ncij,chab->nhiajb", x_nchw, wt_up)          # (N, Ch, H, 2, W, 2)
    n, ch, h, _, w, _ = up.shape
    up = up.reshape(n, ch, 2 * h, 2 * w) + b_up[None, :, None, None]
    cat = jnp.concatenate([up, skip_nchw], axis=1)
    out = jnp.einsum("ncrs,oc->nors", cat, w1) + b1[None, :, None, None]
    return out


# --------------------------------------------------------------------------- main
if __name__ == "__main__":
    key = jax.random.PRNGKey(0)
    k_in, k_skip, k_params = jax.random.split(key, 3)

    # small shapes: batch=2, in_channels=8, out_channels=8, skip_channels=4,
    # spatial 8x8 -> upsampled to 16x16
    Nb, Cin, Cout, Cskip, H, W = 2, 8, 8, 4, 8, 8

    x_nchw = jax.random.normal(k_in, (Nb, Cin, H, W), jnp.float32)
    skip_nchw = jax.random.normal(k_skip, (Nb, Cskip, 2 * H, 2 * W), jnp.float32)

    # The kernel works in NHWC; these transposes are demo-only glue for the NCHW spec.
    x_nhwc = jnp.transpose(x_nchw, (0, 2, 3, 1))
    skip_nhwc = jnp.transpose(skip_nchw, (0, 2, 3, 1))

    block = UpBlockWithSkipPallas(Cin, Cout, Cskip, k_params)
    out_nhwc = block(x_nhwc, skip_nhwc)
    out_nchw = jnp.transpose(out_nhwc, (0, 3, 1, 2)).astype(jnp.float32)
    jax.block_until_ready(out_nchw)
    assert out_nchw.shape == (Nb, Cout, 2 * H, 2 * W), out_nchw.shape

    # Pure-JAX f32 reference; bf16 weights/activations/output in the kernel path, so a
    # generous absolute tolerance is used.
    ref = reference_upblock_nchw(
        x_nchw, skip_nchw, block.wt_up, block.b_up, block.w_1x1, block.b_1x1
    )
    max_err = float(jnp.max(jnp.abs(out_nchw - ref)))
    assert max_err < 5e-2, f"max abs error {max_err}"

    print("KERNEL_OK")
</pallas_src>

<mosaic_0001>
module attributes {stable_mosaic.version = 11 : i64} {
  func.func @fused_upblock_kernel(%arg0: i32, %arg1: memref<1x8x8xf32, #tpu.memory_space<vmem>>, %arg2: memref<1x16x8xf32, #tpu.memory_space<vmem>>, %arg3: memref<2x8x16xbf16, #tpu.memory_space<vmem>>, %arg4: memref<8x16xbf16, #tpu.memory_space<vmem>>, %arg5: memref<1x16xf32, #tpu.memory_space<vmem>>, %arg6: memref<1x16x16xbf16, #tpu.memory_space<vmem>>) attributes {dimension_semantics = [#tpu.dimension_semantics<parallel>], iteration_bounds = array<i64: 16>, scalar_prefetch = 0 : i64, scratch_operands = 0 : i64, tpu.core_type = #tpu.core_type<tc>, window_params = [{transform_indices = @transform_0, window_bounds = array<i64: 1, 8, 8>}, {transform_indices = @transform_1, window_bounds = array<i64: 1, 16, 8>}, {pipeline_mode = #tpu.pipeline_mode<synchronous>, transform_indices = @transform_2, window_bounds = array<i64: 2, 8, 16>}, {pipeline_mode = #tpu.pipeline_mode<synchronous>, transform_indices = @transform_3, window_bounds = array<i64: 8, 16>}, {pipeline_mode = #tpu.pipeline_mode<synchronous>, transform_indices = @transform_4, window_bounds = array<i64: 1, 16>}, {transform_indices = @transform_5, window_bounds = array<i64: 1, 16, 16>}]} {
    %c0 = arith.constant 0 : index
    %c0_0 = arith.constant 0 : index
    %c0_1 = arith.constant 0 : index
    %0 = vector.load %arg1[%c0, %c0_0, %c0_1] : memref<1x8x8xf32, #tpu.memory_space<vmem>>, vector<1x8x8xf32>
    %1 = vector.shape_cast %0 : vector<1x8x8xf32> to vector<8x8xf32>
    %2 = arith.truncf %1 : vector<8x8xf32> to vector<8x8xbf16>
    %c0_2 = arith.constant 0 : index
    %c0_3 = arith.constant 0 : index
    %c0_4 = arith.constant 0 : index
    %3 = vector.load %arg2[%c0_2, %c0_3, %c0_4] : memref<1x16x8xf32, #tpu.memory_space<vmem>>, vector<1x16x8xf32>
    %4 = vector.shape_cast %3 : vector<1x16x8xf32> to vector<16x8xf32>
    %5 = arith.truncf %4 : vector<16x8xf32> to vector<16x8xbf16>
    %c0_5 = arith.constant 0 : index
    %c0_6 = arith.constant 0 : index
    %6 = vector.load %arg4[%c0_5, %c0_6] : memref<8x16xbf16, #tpu.memory_space<vmem>>, vector<8x16xbf16>
    %cst = arith.constant dense<0.000000e+00> : vector<16x16xf32>
    %7 = tpu.matmul %5, %6, %cst {dimension_numbers = #tpu.dot_dimension_numbers<[1], [0], [0], [1], [0, 0, 1, 1], [], []>} : vector<16x8xbf16>, vector<8x16xbf16>, vector<16x16xf32> -> vector<16x16xf32>
    %c0_7 = arith.constant 0 : index
    %c0_8 = arith.constant 0 : index
    %c0_9 = arith.constant 0 : index
    %8 = vector.load %arg3[%c0_7, %c0_8, %c0_9] : memref<2x8x16xbf16, #tpu.memory_space<vmem>>, vector<1x8x16xbf16>
    %9 = vector.shape_cast %8 : vector<1x8x16xbf16> to vector<8x16xbf16>
    %cst_10 = arith.constant dense<0.000000e+00> : vector<8x16xf32>
    %10 = tpu.matmul %2, %9, %cst_10 {dimension_numbers = #tpu.dot_dimension_numbers<[1], [0], [0], [1], [0, 0, 1, 1], [], []>} : vector<8x8xbf16>, vector<8x16xbf16>, vector<8x16xf32> -> vector<8x16xf32>
    %c1 = arith.constant 1 : index
    %c0_11 = arith.constant 0 : index
    %c0_12 = arith.constant 0 : index
    %11 = vector.load %arg3[%c1, %c0_11, %c0_12] : memref<2x8x16xbf16, #tpu.memory_space<vmem>>, vector<1x8x16xbf16>
    %12 = vector.shape_cast %11 : vector<1x8x16xbf16> to vector<8x16xbf16>
    %cst_13 = arith.constant dense<0.000000e+00> : vector<8x16xf32>
    %13 = tpu.matmul %2, %12, %cst_13 {dimension_numbers = #tpu.dot_dimension_numbers<[1], [0], [0], [1], [0, 0, 1, 1], [], []>} : vector<8x8xbf16>, vector<8x16xbf16>, vector<8x16xf32> -> vector<8x16xf32>
    %c0_14 = arith.constant 0 : index
    %c0_15 = arith.constant 0 : index
    %14 = vector.load %arg5[%c0_14, %c0_15] : memref<1x16xf32, #tpu.memory_space<vmem>>, vector<1x16xf32>
    %15 = vector.extract_strided_slice %7 {offsets = [0, 0], sizes = [8, 16], strides = [1, 1]} : vector<16x16xf32> to vector<8x16xf32>
    %16 = arith.addf %10, %15 : vector<8x16xf32>
    %17 = vector.broadcast %14 : vector<1x16xf32> to vector<8x16xf32>
    %18 = arith.addf %16, %17 : vector<8x16xf32>
    %19 = arith.truncf %18 : vector<8x16xf32> to vector<8x16xbf16>
    %c0_16 = arith.constant 0 : index
    %c0_17 = arith.constant 0 : index
    %c0_18 = arith.constant 0 : index
    %20 = vector.load %arg6[%c0_16, %c0_17, %c0_18] : memref<1x16x16xbf16, #tpu.memory_space<vmem>>, vector<1x8x16xbf16>
    %21 = vector.shape_cast %20 : vector<1x8x16xbf16> to vector<8x16xbf16>
    %22 = vector.shape_cast %19 : vector<8x16xbf16> to vector<1x8x16xbf16>
    tpu.vector_store %arg6[%c0_16, %c0_17, %c0_18], %22 {strides = array<i32>} : memref<1x16x16xbf16, #tpu.memory_space<vmem>>, vector<1x8x16xbf16>,
    %23 = vector.extract_strided_slice %7 {offsets = [8, 0], sizes = [8, 16], strides = [1, 1]} : vector<16x16xf32> to vector<8x16xf32>
    %24 = arith.addf %13, %23 : vector<8x16xf32>
    %25 = vector.broadcast %14 : vector<1x16xf32> to vector<8x16xf32>
    %26 = arith.addf %24, %25 : vector<8x16xf32>
    %27 = arith.truncf %26 : vector<8x16xf32> to vector<8x16xbf16>
    %c0_19 = arith.constant 0 : index
    %c8 = arith.constant 8 : index
    %c0_20 = arith.constant 0 : index
    %28 = vector.load %arg6[%c0_19, %c8, %c0_20] : memref<1x16x16xbf16, #tpu.memory_space<vmem>>, vector<1x8x16xbf16>
    %29 = vector.shape_cast %28 : vector<1x8x16xbf16> to vector<8x16xbf16>
    %30 = vector.shape_cast %27 : vector<8x16xbf16> to vector<1x8x16xbf16>
    tpu.vector_store %arg6[%c0_19, %c8, %c0_20], %30 {strides = array<i32>} : memref<1x16x16xbf16, #tpu.memory_space<vmem>>, vector<1x8x16xbf16>,
    return
  }
  func.func @transform_0(%arg0: i32) -> (i32, i32, i32) {
    %c0_i32 = arith.constant 0 : i32
    %c0_i32_0 = arith.constant 0 : i32
    %c0_i32_1 = arith.constant 0 : i32
    return %arg0, %c0_i32, %c0_i32_0 : i32, i32, i32
  }
  func.func @transform_1(%arg0: i32) -> (i32, i32, i32) {
    %c0_i32 = arith.constant 0 : i32
    %c0_i32_0 = arith.constant 0 : i32
    %c0_i32_1 = arith.constant 0 : i32
    return %arg0, %c0_i32, %c0_i32_0 : i32, i32, i32
  }
  func.func @transform_2(%arg0: i32) -> (i32, i32, i32) {
    %c0_i32 = arith.constant 0 : i32
    %c0_i32_0 = arith.constant 0 : i32
    %c0_i32_1 = arith.constant 0 : i32
    %c0_i32_2 = arith.constant 0 : i32
    return %c0_i32, %c0_i32_0, %c0_i32_1 : i32, i32, i32
  }
  func.func @transform_3(%arg0: i32) -> (i32, i32) {
    %c0_i32 = arith.constant 0 : i32
    %c0_i32_0 = arith.constant 0 : i32
    %c0_i32_1 = arith.constant 0 : i32
    return %c0_i32, %c0_i32_0 : i32, i32
  }
  func.func @transform_4(%arg0: i32) -> (i32, i32) {
    %c0_i32 = arith.constant 0 : i32
    %c0_i32_0 = arith.constant 0 : i32
    %c0_i32_1 = arith.constant 0 : i32
    return %c0_i32, %c0_i32_0 : i32, i32
  }
  func.func @transform_5(%arg0: i32) -> (i32, i32, i32) {
    %c0_i32 = arith.constant 0 : i32
    %c0_i32_0 = arith.constant 0 : i32
    %c0_i32_1 = arith.constant 0 : i32
    return %arg0, %c0_i32, %c0_i32_0 : i32, i32, i32
  }
}

</mosaic_0001>

<bundles_post_ra>
// kernel: tpu_custom_call.1
= control target key start
LH: loop header
LB: loop body
LE: loop exit
PB: predicated region body
PF: predicated region fallthrough
CT: control target
= control target key end

     0   :  { %10 = vsyncpa [#allocation3], 0  ;;  %s800_s0 = inlined_call_operand.vmem [shape: f32[16,8,8], index: 0, kind: input, shape index: {}]   ;;  %s801_s1 = inlined_call_operand.vmem [shape: f32[16,16,8], index: 1, kind: input, shape index: {}]   ;;  %s802_s2 = inlined_call_operand.vmem [shape: bf16[2,8,16], index: 2, kind: input, shape index: {}]   ;;  %s803_s3 = inlined_call_operand.vmem [shape: bf16[8,16], index: 3, kind: input, shape index: {}]   ;;  %s804_s4 = inlined_call_operand.vmem [shape: f32[1,16], index: 4, kind: input, shape index: {}]   ;;  %s805_s5 = inlined_call_operand.hbm [shape: bf16[16,16,16], index: 5, kind: output, shape index: {}]  }
   0x1   :  { %12 = vsyncpa [#allocation3 + $0x1], 0  ;;  %s676_s18 = smov 0   ;;  %s678_s19 = smov 0  }
   0x2   :  { %s680_s20 = smov 0   ;;  %s682_s21 = smov 0  }
   0x3 LB: > { %s697_s22 = sadd.s32 4294967295, %s639_s21   ;;  %s490_s23 = sadd.s32 4294967294, %s639_s21   ;;  %s639_s21 = sphi %s682_s21, %s811_s21   ;;  %s635_s20 = sphi %s680_s20, %s810_s20   ;;  %s631_s19 = sphi %s678_s19, %s809_s19   ;;  %s627_s18 = sphi %s676_s18, %s808_s18  }
   0x4   : > { %s701_s24 = sadd.s32 1, %s639_s21   ;;  %s140_s25 = sadd.s32 1, %s635_s20 }
   0x5   : > { %s137_s26 = ssub.s32 %s639_s21, %s701_s24  ;;  %p150_p0 = scmp.ne.s32.totalorder %s635_s20, %s631_s19 }
   0x6   : > { %p138_p1 = scmp.eq.s32.totalorder %s137_s26, 0  ;;  %p151_p2 = scmp.eq.s32.totalorder %s697_s22, 15 }
   0x7   : > { %p156_p3 = scmp.ne.s32.totalorder %s631_s19, %s627_s18  ;;  %p157_p4 = scmp.eq.s32.totalorder %s490_s23, 15 }
   0x8   : > { %s712_s27 = scalar_select %p138_p1, %s635_s20, %s140_s25  }
   0x9   : > { %p714_p5 = por %p151_p2, %p150_p0  ;;  %p718_p6 = por %p157_p4, %p156_p3 }
   0xa   : > { %p493_p7 = scmp.ge.s32.totalorder %s639_s21, 1  ;;  %p199_p8 = scmp.lt.s32.totalorder %s639_s21, 17 }
   0xc   : > { %p200_p9 = pnand %p493_p7, %p199_p8 }
   0xd   : > { %v246_v0 = vld [vmem:[%s803_s3] sm:$0xf] (!%p200_p9)  ;;  %vm251_vm0 = vcmask (!%p200_p9), 1043456   ;;  %v641_v2 = vmov (!%p200_p9), 0.0   ;;  %p231_p10 = scmp.lt.s32.totalorder (!%p200_p9), %s697_s22, 15  ;;  %vm642_vm1 = vmmov (!%p200_p9), 0  }
   0xe   : > { %203 = sbr.rel (%p200_p9) target bundleno = 269 (0x10d), region = 40  ;;  %v296_v1 = vld [vmem:[%s802_s2] sm:$0xf] (!%p200_p9)  ;;  %516 = vmatprep.subr.bf16.mxu0 (!%p200_p9), %v641_v2  ;;  %v253_v3 = vsel (!%p200_p9), %vm251_vm0, %v246_v0, 0  ;;  %522 = vmatprep.subr.bf16.mxu1 (!%p200_p9), %v641_v2  ;;  %v499_v5 = vld [vmem:[%s802_s2 + $0x4] sm:$0xf] (!%p200_p9) }
   0xf   : > { %v304_v4 = vsel (!%p200_p9), %vm251_vm0, %v296_v1, 0  ;;  %517 = vmatpush3.bf16.msra.mxu0 (!%p200_p9), %v253_v3  ;;  %518 = vmatprep.mubr.msk.bf16.mxu0 (!%p200_p9), %vm642_vm1, %v641_v2  ;;  %vm247_vm2 = vcmask (!%p200_p9), 64512   ;;  %v357_v11 = vsel (!%p200_p9), %vm251_vm0, %v499_v5, 0  ;;  %s228_s26 = sand.u32 (!%p200_p9), 1, %s631_s19   ;;  %v501_v13 = vld [vmem:[%s804_s4] ss:$0 sm:$0xff] (!%p200_p9) }
  0x10   : > { %523 = vmatpush3.bf16.msra.mxu1 (!%p200_p9), %v304_v4  ;;  %524 = vmatprep.mubr.msk.bf16.mxu1 (!%p200_p9), %vm642_vm1, %v641_v2  ;;  %s494_s7 = sshll.u32 (!%p200_p9), %s228_s26, 3  ;;  %vm354_vm3 = vcmask (!%p200_p9), 125952   ;;  %s759_s14 = scalar_lea.sflag (!%p200_p9), [#allocation3], %s228_s26 }
  0x11   : > { %528 = vmatprep.subr.bf16.mxu0 (!%p200_p9), %v641_v2  ;;  %s230_s8 = scalar_lea.vmem (!%p200_p9), [#allocation2], %s494_s7 }
  0x15   : > { %s232_s9 = scalar_select %p231_p10, %s697_s22, 15 }
  0x17   : > { %s508_s10 = sshll.u32 %s232_s9, 4  ;;  %s495_s11 = sshll.u32 %s232_s9, 3 }
  0x18   : > { %s239_s16 = scalar_lea.vmem %s801_s1, %s508_s10  ;;  %s234_s25 = scalar_lea.vmem %s800_s0, %s495_s11 }
  0x19   : > { %v243_v6 = vld [vmem:[%s239_s16] sm:$0xff]  ;;  %v244_v7 = vld [vmem:[%s239_s16 + $0x8] sm:$0xff]  ;;  %s509_s9 = sshll.u32 %s697_s22, 7  ;;  %s416_s10 = sshll.u32 %s230_s8, 4  ;;  %s757_s10 = int_to_ptr.vmem [resolvable:$true] %s416_s10 }
  0x1a   : > { %v241_v8 = vld [vmem:[%s234_s25] sm:$0xff]  ;;  %v245_v9 = vpack.c.bf16 %v244_v7, %v243_v6  ;;  %s755_s13 = scalar_lea.hbm %s805_s5, %s509_s9  ;;  %s577_s15 = scalar_lea.vmem %s757_s10, 128 }
  0x1b   : > { %v242_v10 = vpack.c.bf16 %v241_v8, %v241_v8  ;;  %p578_p11 = scmp.ne.s32.totalorder %s757_s10, %s577_s15  ;;  %s643_s22 = smov [#allocation2]  }
  0x1c   : > { %519 = vmatmul.mubr.msk.bf16.vlgmr.msra.gmra.mrb[0].mxu0 %vm247_vm2, %v245_v9  ;;  %s581_s16 = sshll.u32 %s643_s22, 4  ;;  %s582_s16 = int_to_ptr.vmem [resolvable:$false] %s581_s16 }
  0x1d   : > { %525 = vmatmul.mubr.msk.bf16.vlgmr.msra.gmra.mrb[0].mxu1 %vm247_vm2, %v242_v10  ;;  %529 = vmatpush3.bf16.msra.mxu0 %v357_v11  ;;  %p579_p12 = pnand %p578_p11, %p714_p5  ;;  %s583_s17 = scalar_lea.vmem %s582_s16, 256 }
  0x1e   : > { %530 = vmatprep.mubr.msk.bf16.mxu0 %vm642_vm1, %v641_v2  ;;  %p584_p0 = scmp.lt.s32.totalorder %s757_s10, %s582_s16  ;;  %p585_p1 = scmp.lt.s32.totalorder %s583_s17, %s577_s15 }
  0x1f   : > { %p580_p13 = pneg %p579_p12 }
  0x20   : > { %p586_p2 = por %p585_p1, %p584_p0 }
  0x22   : > { %p587_p3 = pnand %p586_p2, %p580_p13 }
  0x24   : > { %531 = vmatmul.mubr.msk.bf16.vlgmr.msra.gmra.mrb[4].mxu0 %vm247_vm2, %v242_v10 }
  0xef   : > { %v289_v12 = vpop.f32.mrb[0].mxu0 }
  0xf0   : > { %v340_v14 = vpop.f32.mrb[0].mxu1  ;;  %v520_v16 = vpop.f32.mrb[1].mxu0 }
  0xf1   : > { %v341_v15 = vadd.f32 %v340_v14, %v289_v12  ;;  %v526_v17 = vpop.f32.mrb[1].mxu1  ;;  %v292_v18 = vpop.f32.mrb[2].mxu0 }
  0xf2   : > { %v343_v19 = vpop.f32.mrb[2].mxu1  ;;  %v521_v21 = vpop.f32.mrb[3].mxu0 }
  0xf3   : > { %v352_v20 = vadd.f32 %v501_v13, %v341_v15  ;;  %v527_v22 = vpop.f32.mrb[3].mxu1 }
  0xf5   : > { %v353_v23 = vpack.c.bf16 %v352_v20, %v352_v20 }
  0xf7   : > { %355 = vst.msk [vmem:[%s230_s8] sm:$0xf] %vm354_vm3, %v353_v23  ;;  %v393_v24 = vpop.f32.mrb[4].mxu0 }
  0xf8   : > { %v394_v25 = vadd.f32 %v393_v24, %v292_v18  ;;  %v532_v26 = vpop.f32.mrb[5].mxu0 }
  0xf9   : > { %v396_v27 = vpop.f32.mrb[6].mxu0 }
  0xfa   : > { %v399_v28 = vadd.f32 %v501_v13, %v394_v25  ;;  %v533_v29 = vpop.f32.mrb[7].mxu0 }
  0xfc   : > { %v400_v30 = vpack.c.bf16 %v399_v28, %v399_v28 }
  0xfe   : > { %401 = vst.msk [vmem:[%s230_s8 + $0x4] sm:$0xf] %vm354_vm3, %v400_v30 }
  0xff   : > { %590 = shalt.err (!%p587_p3)
}
 0x100   : > { %s591_s23 = scalar_lea.hbm %s755_s13, 128  ;;  %s595_s30 = scalar_lea.hbm %s805_s5, 2048 }
 0x101   : > { %p592_p4 = scmp.ne.s32.totalorder %s755_s13, %s591_s23  ;;  %p596_p9 = scmp.lt.u32.totalorder %s755_s13, %s805_s5 }
 0x102   : > { %p597_p10 = scmp.lt.u32.totalorder %s595_s30, %s591_s23  ;;  %p599_p12 = scmp.lt.u32.totalorder %s591_s23, %s755_s13 }
 0x103   : > { %p593_p7 = pnand %p592_p4, %p714_p5 }
 0x104   : > { %p598_p11 = por %p597_p10, %p596_p9 }
 0x105   : > { %p594_p8 = pneg %p593_p7 }
 0x106   : > { %p600_p13 = por %p599_p12, %p598_p11 }
 0x108   : > { %p601_p0 = pnand %p600_p13, %p594_p8 }
 0x10a   : > { %604 = shalt.err (!%p601_p0)
}
 0x10b   : > { %s644_s8 = smov 64   ;;  %s645_s9 = smov 4  }
 0x10c   : > { %534 = dma.vmem_to_hbm [thread:$0]  (%p714_p5), %s757_s10, 128, %s755_s13, %s759_s14, %s644_s8, %s644_s8, %s645_s9  }
 0x10d PF: > { %p540_p1 = scmp.ge.s32.totalorder %s639_s21, 2  ;;  %s431_s11 = sand.u32 1, %s627_s18  }
 0x10e   : > { %s432_s12 = scalar_lea.sflag [#allocation3], %s431_s11 }
 0x10f   : > { %p537_p2 = pnand %p540_p1, %p718_p6 }
 0x111   : > { %622 = dma.done.wait (!%p537_p2), %s432_s12, 128  }
 0x112   : > { %624 = vsyncadd (!%p537_p2), %s432_s12, 4294967168  ;;  %p15_p3 = scmp.ge.s32.totalorder %s701_s24, 18   ;;  %s808_s18 = smov %s631_s19 }
 0x113   : > { %s809_s19 = smov %s635_s20  ;;  %s810_s20 = smov %s712_s27 }
 0x114   : > { %s811_s21 = smov %s701_s24  ;;  %17 = sbr.rel (!%p15_p3) target bundleno = 3 (0x3), region = 79 }
 0x11b   :  { %437 = vsyncpa [#allocation3], 1 }
 0x11c   :  { %439 = vsyncpa [#allocation3 + $0x1], 1 }

</bundles_post_ra>
